<compile_context>
chip_gen: v6e
topology: v6e:2x2x1
jax: 0.10.0
libtpu: 0.0.40
codegen_flags: <defaults>
</compile_context>

<pallas_src>
from functools import lru_cache, partial

import jax
import jax.numpy as jnp
from jax import lax
from jax.experimental import pallas as pl
from jax.experimental.pallas import tpu as pltpu

LN_EPS = 1e-5   # nn.LayerNorm default


def _layernorm(x, gamma, beta):
    mu = jnp.mean(x, axis=-1, keepdims=True)
    var = jnp.mean(jnp.square(x - mu), axis=-1, keepdims=True)
    return (x - mu) * lax.rsqrt(var + LN_EPS) * gamma + beta


def _pick_tile(n, max_tile=256):
    # largest power-of-two tile (>=8) that divides n; fall back to the full dim.
    for t in (256, 128, 64, 32, 16, 8):
        if t <= max_tile and t <= n and n % t == 0:
            return t
    # TODO(synk): for ragged N (e.g. 577 with a cls token) pad N to a multiple of 128/256 up front.
    return n


@lru_cache(maxsize=None)
def _buffered_one_supported():
    """Probe whether pipeline_mode=pl.Buffered(1) compiles/runs on this jax build."""
    try:
        def _k(x_ref, o_ref):
            o_ref[...] = x_ref[...] + 1.0
        f = pl.pallas_call(
            _k,
            out_shape=jax.ShapeDtypeStruct((8, 128), jnp.float32),
            grid=(1,),
            in_specs=[pl.BlockSpec((8, 128), lambda i: (0, 0),
                                   pipeline_mode=pl.Buffered(1))],
            out_specs=pl.BlockSpec((8, 128), lambda i: (0, 0)),
        )
        jax.block_until_ready(f(jnp.zeros((8, 128), jnp.float32)))
        return True
    except Exception:
        return False


def _hw_config():
    """(vmem_limit_bytes, max_query_tile, tight_vmem) tuned per TPU generation."""
    cap = 64 * 1024 * 1024
    try:
        info = pltpu.get_tpu_info()
        cap = int(getattr(info, "vmem_capacity_bytes", 0) or 0) or cap
    except Exception:
        pass
    if cap <= 64 * 1024 * 1024:
        # v7x-class: 64 MiB / TensorCore -> tight scoped limit leaves Mosaic headroom.
        return 32 * 1024 * 1024, 128, True
    # v5e / v6e: 128 MiB physical VMEM.
    return 100 * 1024 * 1024, 256, False


# --------------------------------------------------------------------------
# pass 1: K / V projection  (grid = (B, N // TN))
# --------------------------------------------------------------------------
def kv_kernel(x_ref, g1_ref, b1_ref, wkv_ref, k_ref, v_ref):
    x = x_ref[...].astype(jnp.float32)                                  # (TN, C)
    C = x.shape[-1]
    h = _layernorm(x, g1_ref[...], b1_ref[...]).astype(jnp.bfloat16)    # bf16 MXU operand
    kv = jnp.dot(h, wkv_ref[...], preferred_element_type=jnp.float32)   # (TN, 2C), one weight push
    k_ref[...] = kv[:, :C].astype(k_ref.dtype)
    v_ref[...] = kv[:, C:].astype(v_ref.dtype)


# --------------------------------------------------------------------------
# pass 2: q proj + attention (query tile vs full K/V) + proj + residual + MLP + residual
# grid = (B, N // TQ)
# --------------------------------------------------------------------------
def attn_mlp_kernel(x_ref, k_ref, v_ref,
                    g1_ref, b1_ref, wq_ref,
                    wproj_ref, bproj_ref,
                    g2_ref, b2_ref,
                    wfc1_ref, bfc1_ref,
                    wfc2_ref, bfc2_ref,
                    o_ref, ctx_ref, *, num_heads):
    x = x_ref[...].astype(jnp.float32)            # (TQ, C) residual stream
    C = x.shape[-1]
    Dh = C // num_heads
    scale = Dh ** -0.5

    # hoisted parameter loads
    bproj = bproj_ref[...]
    bfc1 = bfc1_ref[...]
    bfc2 = bfc2_ref[...]

    # ---- fused q projection (saves q HBM round trip; LN1 recompute is cheap VPU work) ----
    h1 = _layernorm(x, g1_ref[...], b1_ref[...]).astype(jnp.bfloat16)
    q = jnp.dot(h1, wq_ref[...], preferred_element_type=jnp.float32)     # (TQ, C) f32
    q = (q * scale).astype(jnp.bfloat16)          # fold 1/sqrt(Dh) into q once per tile

    # ---- multi-head attention: static head loop, static lane offsets ----
    for hd in range(num_heads):
        lo = hd * Dh
        qh = q[:, lo:lo + Dh]                     # (TQ, Dh) bf16
        kh = k_ref[:, lo:lo + Dh]                 # (N,  Dh) ref slice (no full-K value)
        vh = v_ref[:, lo:lo + Dh]                 # (N,  Dh) ref slice
        s = lax.dot_general(qh, kh, (((1,), (1,)), ((), ())),            # contract Dh
                            preferred_element_type=jnp.float32)          # (TQ, N)
        s = s - jnp.max(s, axis=-1, keepdims=True)
        p = jnp.exp(s)
        # normalize AFTER the PV matmul: (TQ, Dh) multiplies instead of (TQ, N)
        ctx_h = jnp.dot(p.astype(jnp.bfloat16), vh,
                        preferred_element_type=jnp.float32)              # (TQ, Dh) f32
        inv = pl.reciprocal(jnp.sum(p, axis=-1, keepdims=True), approx=True)
        ctx_ref[:, lo:lo + Dh] = ctx_h * inv      # f32 scratch (review correctness note)

    attn = jnp.dot(ctx_ref[...].astype(jnp.bfloat16), wproj_ref[...],
                   preferred_element_type=jnp.float32) + bproj
    x = x + attn

    # ---- MLP branch ----
    h2 = _layernorm(x, g2_ref[...], b2_ref[...]).astype(jnp.bfloat16)
    h2 = jnp.dot(h2, wfc1_ref[...], preferred_element_type=jnp.float32) + bfc1
    h2 = jax.nn.gelu(h2, approximate=True).astype(jnp.bfloat16)          # tanh GELU -> EUP
    h2 = jnp.dot(h2, wfc2_ref[...], preferred_element_type=jnp.float32) + bfc2

    o_ref[...] = (x + h2).astype(o_ref.dtype)


# --------------------------------------------------------------------------
# wrapper
# --------------------------------------------------------------------------
def block_forward(x, params, *, num_heads):
    B, N, C = x.shape
    assert C % num_heads == 0
    hidden = params["w_fc1"].shape[1]
    bf16 = jnp.bfloat16

    vmem_limit, max_tq, tight_vmem = _hw_config()
    buffered_ok = _buffered_one_supported()

    # weights cast to bf16 once on the host side (full-rate MXU, half the VMEM residency)
    w_qkv = params["w_qkv"].astype(bf16)
    wq = w_qkv[:, :C]                 # (C, C)   — resident in pass 2
    w_kv = w_qkv[:, C:]               # (C, 2C)  — single matmul in pass 1
    w_proj = params["w_proj"].astype(bf16)
    w_fc1 = params["w_fc1"].astype(bf16)
    w_fc2 = params["w_fc2"].astype(bf16)

    TN = _pick_tile(N, max_tile=256)          # token tile for the K/V projection pass
    TQ = _pick_tile(N, max_tile=max_tq)       # query tile for the attention/MLP pass

    cparams = pltpu.CompilerParams(
        dimension_semantics=("parallel", "parallel"),
        vmem_limit_bytes=vmem_limit)

    def resident(shape):
        # whole-array block, constant index map -> resident across the grid.
        idx = lambda b, t: (0,) * len(shape)
        if buffered_ok:
            # second buffer buys nothing for a constant-index block.
            return pl.BlockSpec(shape, idx, pipeline_mode=pl.Buffered(1))
        return pl.BlockSpec(shape, idx)

    def kv_seq_spec():
        # full-sequence K/V: index changes only when b changes (once every N/TQ steps).
        idx = lambda b, t: (b, 0, 0)
        if buffered_ok and tight_vmem:
            return pl.BlockSpec((None, N, C), idx, pipeline_mode=pl.Buffered(1))
        return pl.BlockSpec((None, N, C), idx)

    f32b, bf16b = 4, 2

    # ---- pass 1: K / V (bf16) ----
    ce1 = pl.CostEstimate(
        flops=2 * B * N * C * (2 * C),
        transcendentals=B * N,                                   # rsqrt per token (LN1)
        bytes_accessed=B * N * C * f32b + (C * 2 * C) * bf16b
                       + 2 * B * N * C * bf16b + 2 * C * f32b)
    k, v = pl.pallas_call(
        kv_kernel,
        out_shape=tuple(jax.ShapeDtypeStruct((B, N, C), bf16) for _ in range(2)),
        grid=(B, N // TN),
        in_specs=[
            pl.BlockSpec((None, TN, C), lambda b, t: (b, t, 0)),   # x tile
            resident((1, C)), resident((1, C)),                    # LN1 gamma, beta
            resident((C, 2 * C)),                                  # W_kv (bf16)
        ],
        out_specs=tuple(pl.BlockSpec((None, TN, C), lambda b, t: (b, t, 0))
                        for _ in range(2)),
        compiler_params=cparams,
        cost_estimate=ce1,
    )(x, params["g1"], params["b1"], w_kv)

    # ---- pass 2: q proj + attention + proj + MLP ----
    w_bytes = (2 * C * C + 2 * C * hidden) * bf16b + (4 * C + hidden + 2 * C) * f32b
    ce2 = pl.CostEstimate(
        flops=2 * B * N * C * C                   # q projection
              + 4 * B * N * N * C                 # QK^T + PV
              + 2 * B * N * C * C                 # attention output projection
              + 4 * B * N * C * hidden,           # fc1 + fc2
        transcendentals=B * N * (N + hidden + 3),
        bytes_accessed=2 * B * N * C * f32b + 2 * B * N * C * bf16b + w_bytes)

    out = pl.pallas_call(
        partial(attn_mlp_kernel, num_heads=num_heads),
        out_shape=jax.ShapeDtypeStruct((B, N, C), x.dtype),
        grid=(B, N // TQ),
        in_specs=[
            pl.BlockSpec((None, TQ, C), lambda b, t: (b, t, 0)),   # x (residual) tile
            kv_seq_spec(),                                         # K, full sequence
            kv_seq_spec(),                                         # V, full sequence
            resident((1, C)), resident((1, C)),                    # LN1 gamma, beta (for q)
            resident((C, C)),                                      # Wq
            resident((C, C)), resident((1, C)),                    # proj weight, bias
            resident((1, C)), resident((1, C)),                    # LN2 gamma, beta
            resident((C, hidden)), resident((1, hidden)),          # fc1 weight, bias
            resident((hidden, C)), resident((1, C)),               # fc2 weight, bias
        ],
        out_specs=pl.BlockSpec((None, TQ, C), lambda b, t: (b, t, 0)),
        scratch_shapes=[pltpu.VMEM((TQ, C), jnp.float32)],         # f32 ctx (per-head writes)
        compiler_params=cparams,
        cost_estimate=ce2,
    )(x, k, v,
      params["g1"], params["b1"], wq,
      w_proj, params["b_proj"],
      params["g2"], params["b2"],
      w_fc1, params["b_fc1"],
      w_fc2, params["b_fc2"])
    return out


# --------------------------------------------------------------------------
# params + pure-JAX reference (PyTorch semantics, f32, exact GELU)
# --------------------------------------------------------------------------
def make_params(key, dim, num_heads, mlp_ratio=4.0):
    hidden = int(dim * mlp_ratio)
    ks = jax.random.split(key, 4)
    std = 0.02
    return {
        "g1": jnp.ones((1, dim), jnp.float32),
        "b1": jnp.zeros((1, dim), jnp.float32),
        "g2": jnp.ones((1, dim), jnp.float32),
        "b2": jnp.zeros((1, dim), jnp.float32),
        # Linear weights stored already transposed to (in, out) for x @ W
        "w_qkv": jax.random.normal(ks[0], (dim, 3 * dim), jnp.float32) * std,  # qkv_bias=False
        "w_proj": jax.random.normal(ks[1], (dim, dim), jnp.float32) * std,
        "b_proj": jnp.zeros((1, dim), jnp.float32),
        "w_fc1": jax.random.normal(ks[2], (dim, hidden), jnp.float32) * std,
        "b_fc1": jnp.zeros((1, hidden), jnp.float32),
        "w_fc2": jax.random.normal(ks[3], (hidden, dim), jnp.float32) * std,
        "b_fc2": jnp.zeros((1, dim), jnp.float32),
    }


def block_reference(x, p, *, num_heads):
    B, N, C = x.shape
    Dh = C // num_heads
    scale = Dh ** -0.5

    def ln(v, g, b):
        mu = jnp.mean(v, -1, keepdims=True)
        var = jnp.mean(jnp.square(v - mu), -1, keepdims=True)
        return (v - mu) / jnp.sqrt(var + LN_EPS) * g + b

    h = ln(x, p["g1"], p["b1"])
    qkv = h @ p["w_qkv"]
    q, k, v = jnp.split(qkv, 3, axis=-1)
    q = q.reshape(B, N, num_heads, Dh).transpose(0, 2, 1, 3)
    k = k.reshape(B, N, num_heads, Dh).transpose(0, 2, 1, 3)
    v = v.reshape(B, N, num_heads, Dh).transpose(0, 2, 1, 3)
    a = jnp.einsum("bhnd,bhmd->bhnm", q, k) * scale
    a = jax.nn.softmax(a, axis=-1)
    ctx = jnp.einsum("bhnm,bhmd->bhnd", a, v).transpose(0, 2, 1, 3).reshape(B, N, C)
    x = x + (ctx @ p["w_proj"] + p["b_proj"])
    h2 = ln(x, p["g2"], p["b2"])
    h2 = jax.nn.gelu(h2 @ p["w_fc1"] + p["b_fc1"], approximate=False)
    return x + (h2 @ p["w_fc2"] + p["b_fc2"])


if __name__ == "__main__":
    B, N, dim, num_heads = 2, 16, 32, 4
    key = jax.random.PRNGKey(0)
    kx, kp = jax.random.split(key)
    x = jax.random.normal(kx, (B, N, dim), jnp.float32)
    params = make_params(kp, dim, num_heads)

    out = block_forward(x, params, num_heads=num_heads)
    out = jax.block_until_ready(out)

    ref = block_reference(x, params, num_heads=num_heads)
    assert out.shape == (B, N, dim)
    # bf16 matmuls + tanh GELU + approx reciprocal loosen the tolerance slightly vs pure f32.
    assert jnp.allclose(out, ref, atol=2e-2, rtol=2e-2), "mismatch vs reference"
    print("KERNEL_OK")
</pallas_src>

<mosaic_0001>
module attributes {stable_mosaic.version = 11 : i64} {
  func.func @_k(%arg0: i32, %arg1: memref<8x128xf32, #tpu.memory_space<vmem>>, %arg2: memref<8x128xf32, #tpu.memory_space<vmem>>) attributes {dimension_semantics = [#tpu.dimension_semantics<arbitrary>], iteration_bounds = array<i64: 1>, scalar_prefetch = 0 : i64, scratch_operands = 0 : i64, tpu.core_type = #tpu.core_type<tc>, window_params = [{pipeline_mode = #tpu.pipeline_mode<synchronous>, transform_indices = @transform_0, window_bounds = array<i64: 8, 128>}, {pipeline_mode = #tpu.pipeline_mode<synchronous>, transform_indices = @transform_1, window_bounds = array<i64: 8, 128>}]} {
    %c0 = arith.constant 0 : index
    %c0_0 = arith.constant 0 : index
    %0 = vector.load %arg1[%c0, %c0_0] : memref<8x128xf32, #tpu.memory_space<vmem>>, vector<8x128xf32>
    %cst = arith.constant 1.000000e+00 : f32
    %1 = vector.broadcast %cst : f32 to vector<8x128xf32>
    %2 = arith.addf %0, %1 : vector<8x128xf32>
    %c0_1 = arith.constant 0 : index
    %c0_2 = arith.constant 0 : index
    %3 = vector.load %arg2[%c0_1, %c0_2] : memref<8x128xf32, #tpu.memory_space<vmem>>, vector<8x128xf32>
    tpu.vector_store %arg2[%c0_1, %c0_2], %2 {strides = array<i32>} : memref<8x128xf32, #tpu.memory_space<vmem>>, vector<8x128xf32>,
    return
  }
  func.func @transform_0(%arg0: i32) -> (i32, i32) {
    %c0_i32 = arith.constant 0 : i32
    %c0_i32_0 = arith.constant 0 : i32
    %c0_i32_1 = arith.constant 0 : i32
    return %c0_i32, %c0_i32_0 : i32, i32
  }
  func.func @transform_1(%arg0: i32) -> (i32, i32) {
    %c0_i32 = arith.constant 0 : i32
    %c0_i32_0 = arith.constant 0 : i32
    %c0_i32_1 = arith.constant 0 : i32
    return %c0_i32, %c0_i32_0 : i32, i32
  }
}

module attributes {stable_mosaic.version = 11 : i64} {
  func.func @kv_kernel(%arg0: i32, %arg1: i32, %arg2: memref<1x16x32xf32, #tpu.memory_space<vmem>>, %arg3: memref<1x32xf32, #tpu.memory_space<vmem>>, %arg4: memref<1x32xf32, #tpu.memory_space<vmem>>, %arg5: memref<32x64xbf16, #tpu.memory_space<vmem>>, %arg6: memref<1x16x32xbf16, #tpu.memory_space<vmem>>, %arg7: memref<1x16x32xbf16, #tpu.memory_space<vmem>>) attributes {dimension_semantics = [#tpu.dimension_semantics<parallel>, #tpu.dimension_semantics<parallel>], iteration_bounds = array<i64: 2, 1>, scalar_prefetch = 0 : i64, scratch_operands = 0 : i64, tpu.core_type = #tpu.core_type<tc>, window_params = [{transform_indices = @transform_0, window_bounds = array<i64: 1, 16, 32>}, {pipeline_mode = #tpu.pipeline_mode<synchronous>, transform_indices = @transform_1, window_bounds = array<i64: 1, 32>}, {pipeline_mode = #tpu.pipeline_mode<synchronous>, transform_indices = @transform_2, window_bounds = array<i64: 1, 32>}, {pipeline_mode = #tpu.pipeline_mode<synchronous>, transform_indices = @transform_3, window_bounds = array<i64: 32, 64>}, {transform_indices = @transform_4, window_bounds = array<i64: 1, 16, 32>}, {transform_indices = @transform_5, window_bounds = array<i64: 1, 16, 32>}]} {
    %c0 = arith.constant 0 : index
    %c0_0 = arith.constant 0 : index
    %c0_1 = arith.constant 0 : index
    %0 = vector.load %arg2[%c0, %c0_0, %c0_1] : memref<1x16x32xf32, #tpu.memory_space<vmem>>, vector<1x16x32xf32>
    %1 = vector.shape_cast %0 : vector<1x16x32xf32> to vector<16x32xf32>
    %c0_2 = arith.constant 0 : index
    %c0_3 = arith.constant 0 : index
    %2 = vector.load %arg3[%c0_2, %c0_3] : memref<1x32xf32, #tpu.memory_space<vmem>>, vector<1x32xf32>
    %c0_4 = arith.constant 0 : index
    %c0_5 = arith.constant 0 : index
    %3 = vector.load %arg4[%c0_4, %c0_5] : memref<1x32xf32, #tpu.memory_space<vmem>>, vector<1x32xf32>
    %cst = arith.constant dense<0.000000e+00> : vector<16xf32>
    %4 = vector.multi_reduction <add>, %1, %cst [1] : vector<16x32xf32> to vector<16xf32>
    %5 = vector.shape_cast %4 : vector<16xf32> to vector<16x1xf32>
    %cst_6 = arith.constant 3.200000e+01 : f32
    %6 = vector.broadcast %cst_6 : f32 to vector<16x1xf32>
    %7 = arith.divf %5, %6 : vector<16x1xf32>
    %8 = vector.broadcast %7 : vector<16x1xf32> to vector<16x32xf32>
    %9 = arith.subf %1, %8 : vector<16x32xf32>
    %10 = arith.mulf %9, %9 : vector<16x32xf32>
    %cst_7 = arith.constant dense<0.000000e+00> : vector<16xf32>
    %11 = vector.multi_reduction <add>, %10, %cst_7 [1] : vector<16x32xf32> to vector<16xf32>
    %12 = vector.shape_cast %11 : vector<16xf32> to vector<16x1xf32>
    %cst_8 = arith.constant 3.200000e+01 : f32
    %13 = vector.broadcast %cst_8 : f32 to vector<16x1xf32>
    %14 = arith.divf %12, %13 : vector<16x1xf32>
    %15 = vector.broadcast %7 : vector<16x1xf32> to vector<16x32xf32>
    %16 = arith.subf %1, %15 : vector<16x32xf32>
    %cst_9 = arith.constant 9.99999974E-6 : f32
    %17 = vector.broadcast %cst_9 : f32 to vector<16x1xf32>
    %18 = arith.addf %14, %17 : vector<16x1xf32>
    %19 = math.rsqrt %18 : vector<16x1xf32>
    %20 = vector.broadcast %19 : vector<16x1xf32> to vector<16x32xf32>
    %21 = arith.mulf %16, %20 : vector<16x32xf32>
    %22 = vector.broadcast %2 : vector<1x32xf32> to vector<16x32xf32>
    %23 = arith.mulf %21, %22 : vector<16x32xf32>
    %24 = vector.broadcast %3 : vector<1x32xf32> to vector<16x32xf32>
    %25 = arith.addf %23, %24 : vector<16x32xf32>
    %26 = arith.truncf %25 : vector<16x32xf32> to vector<16x32xbf16>
    %c0_10 = arith.constant 0 : index
    %c0_11 = arith.constant 0 : index
    %27 = vector.load %arg5[%c0_10, %c0_11] : memref<32x64xbf16, #tpu.memory_space<vmem>>, vector<32x64xbf16>
    %cst_12 = arith.constant dense<0.000000e+00> : vector<16x64xf32>
    %28 = tpu.matmul %26, %27, %cst_12 {dimension_numbers = #tpu.dot_dimension_numbers<[1], [0], [0], [1], [0, 0, 1, 1], [], []>} : vector<16x32xbf16>, vector<32x64xbf16>, vector<16x64xf32> -> vector<16x64xf32>
    %29 = vector.extract_strided_slice %28 {offsets = [0, 0], sizes = [16, 32], strides = [1, 1]} : vector<16x64xf32> to vector<16x32xf32>
    %30 = arith.truncf %29 : vector<16x32xf32> to vector<16x32xbf16>
    %c0_13 = arith.constant 0 : index
    %c0_14 = arith.constant 0 : index
    %c0_15 = arith.constant 0 : index
    %31 = vector.load %arg6[%c0_13, %c0_14, %c0_15] : memref<1x16x32xbf16, #tpu.memory_space<vmem>>, vector<1x16x32xbf16>
    %32 = vector.shape_cast %31 : vector<1x16x32xbf16> to vector<16x32xbf16>
    %33 = vector.shape_cast %30 : vector<16x32xbf16> to vector<1x16x32xbf16>
    tpu.vector_store %arg6[%c0_13, %c0_14, %c0_15], %33 {strides = array<i32>} : memref<1x16x32xbf16, #tpu.memory_space<vmem>>, vector<1x16x32xbf16>,
    %34 = vector.extract_strided_slice %28 {offsets = [0, 32], sizes = [16, 32], strides = [1, 1]} : vector<16x64xf32> to vector<16x32xf32>
    %35 = arith.truncf %34 : vector<16x32xf32> to vector<16x32xbf16>
    %c0_16 = arith.constant 0 : index
    %c0_17 = arith.constant 0 : index
    %c0_18 = arith.constant 0 : index
    %36 = vector.load %arg7[%c0_16, %c0_17, %c0_18] : memref<1x16x32xbf16, #tpu.memory_space<vmem>>, vector<1x16x32xbf16>
    %37 = vector.shape_cast %36 : vector<1x16x32xbf16> to vector<16x32xbf16>
    %38 = vector.shape_cast %35 : vector<16x32xbf16> to vector<1x16x32xbf16>
    tpu.vector_store %arg7[%c0_16, %c0_17, %c0_18], %38 {strides = array<i32>} : memref<1x16x32xbf16, #tpu.memory_space<vmem>>, vector<1x16x32xbf16>,
    return
  }
  func.func @transform_0(%arg0: i32, %arg1: i32) -> (i32, i32, i32) {
    %c0_i32 = arith.constant 0 : i32
    %c0_i32_0 = arith.constant 0 : i32
    return %arg0, %arg1, %c0_i32 : i32, i32, i32
  }
  func.func @transform_1(%arg0: i32, %arg1: i32) -> (i32, i32) {
    %c0_i32 = arith.constant 0 : i32
    %c0_i32_0 = arith.constant 0 : i32
    %c0_i32_1 = arith.constant 0 : i32
    return %c0_i32, %c0_i32_0 : i32, i32
  }
  func.func @transform_2(%arg0: i32, %arg1: i32) -> (i32, i32) {
    %c0_i32 = arith.constant 0 : i32
    %c0_i32_0 = arith.constant 0 : i32
    %c0_i32_1 = arith.constant 0 : i32
    return %c0_i32, %c0_i32_0 : i32, i32
  }
  func.func @transform_3(%arg0: i32, %arg1: i32) -> (i32, i32) {
    %c0_i32 = arith.constant 0 : i32
    %c0_i32_0 = arith.constant 0 : i32
    %c0_i32_1 = arith.constant 0 : i32
    return %c0_i32, %c0_i32_0 : i32, i32
  }
  func.func @transform_4(%arg0: i32, %arg1: i32) -> (i32, i32, i32) {
    %c0_i32 = arith.constant 0 : i32
    %c0_i32_0 = arith.constant 0 : i32
    return %arg0, %arg1, %c0_i32 : i32, i32, i32
  }
  func.func @transform_5(%arg0: i32, %arg1: i32) -> (i32, i32, i32) {
    %c0_i32 = arith.constant 0 : i32
    %c0_i32_0 = arith.constant 0 : i32
    return %arg0, %arg1, %c0_i32 : i32, i32, i32
  }
}

</mosaic_0001>

<bundles_post_ra>
// kernel: tpu_custom_call.1
= control target key start
LH: loop header
LB: loop body
LE: loop exit
PB: predicated region body
PF: predicated region fallthrough
CT: control target
= control target key end

     0   :  { %6 = vsyncpa [#allocation3], 0  ;;  %s103_s0 = inlined_call_operand.hbm [shape: f32[8,128], index: 0, kind: input, shape index: {}]   ;;  %s104_s1 = inlined_call_operand.hbm [shape: f32[8,128], index: 1, kind: output, shape index: {}]  }
   0x1   :  { %7 = vsyncpa [#allocation4], 0  ;;  %s85_s6 = smov [#allocation2]  }
   0x2   :  { %s14_s7 = sshll.u32 %s85_s6, 4  ;;  %s15_s7 = int_to_ptr.vmem [resolvable:$true] %s14_s7 }
   0x3   :  { %s49_s8 = scalar_lea.vmem %s15_s7, 128  ;;  %p54_p1 = scmp.lt.s32.totalorder %s15_s7, %s15_s7 }
   0x4   :  { %p50_p0 = scmp.ne.s32.totalorder %s15_s7, %s49_s8  ;;  %p55_p2 = scmp.lt.s32.totalorder %s49_s8, %s49_s8 }
   0x6   :  { %p56_p3 = por %p55_p2, %p54_p1 }
   0x8   :  { %p57_p4 = pnand %p56_p3, %p50_p0 }
   0xa   :  { %60 = shalt.err (!%p57_p4)
}
   0xb   :  { %17 = dma.hbm_to_vmem [thread:$0]  %s103_s0, 128, %s15_s7, [#allocation3]  }
   0xc   :  { %81 = dma.done.wait [#allocation3], 128  }
   0xd   :  { %82 = vsyncadd [#allocation3], 4294967168  ;;  %s86_s11 = smov [#allocation5]   ;;  %v21_v0 = vld [vmem:[#allocation2] sm:$0xff] }
   0xe   :  { %s30_s12 = sshll.u32 %s86_s11, 4  ;;  %v22_v1 = vadd.f32 1.0, %v21_v0  ;;  %s31_s12 = int_to_ptr.vmem [resolvable:$true] %s30_s12 }
   0xf   :  { %s61_s13 = scalar_lea.vmem %s31_s12, 128  ;;  %p66_p6 = scmp.lt.s32.totalorder %s31_s12, %s31_s12 }
  0x10   :  { %23 = vst [vmem:[#allocation5] sm:$0xff] %v22_v1  ;;  %p62_p5 = scmp.ne.s32.totalorder %s31_s12, %s61_s13  ;;  %p67_p7 = scmp.lt.s32.totalorder %s61_s13, %s61_s13 }
  0x12   :  { %p68_p8 = por %p67_p7, %p66_p6 }
  0x14   :  { %p69_p9 = pnand %p68_p8, %p62_p5 }
  0x16   :  { %72 = shalt.err (!%p69_p9)
}
  0x17   :  { %33 = dma.vmem_to_hbm [thread:$0]  %s31_s12, 128, %s104_s1, [#allocation4]  }
  0x18   :  { %83 = dma.done.wait [#allocation4], 128  }
  0x19   :  { %84 = vsyncadd [#allocation4], 4294967168 }
  0x1a   :  { %37 = vsyncpa [#allocation3], 1 }
  0x1b   :  { %38 = vsyncpa [#allocation4], 1 }

// kernel: tpu_custom_call.1
= control target key start
LH: loop header
LB: loop body
LE: loop exit
PB: predicated region body
PF: predicated region fallthrough
CT: control target
= control target key end

     0   :  { %s1181_s0 = inlined_call_operand.hbm [shape: f32[2,16,32], index: 0, kind: input, shape index: {}]   ;;  %s1182_s1 = inlined_call_operand.vmem [shape: f32[1,32], index: 1, kind: input, shape index: {}]   ;;  %s1183_s2 = inlined_call_operand.vmem [shape: f32[1,32], index: 2, kind: input, shape index: {}]   ;;  %s1184_s3 = inlined_call_operand.hbm [shape: bf16[32,64], index: 3, kind: input, shape index: {}]   ;;  %s1185_s4 = inlined_call_operand.hbm [shape: bf16[2,16,32], index: 4, kind: output, shape index: {0}]   ;;  %s1186_s5 = inlined_call_operand.hbm [shape: bf16[2,16,32], index: 5, kind: output, shape index: {1}]  }
   0x1   :  { %1189 = sst [smem:[#allocation15_spill]] %s1184_s3 }
   0x2   :  { %11 = vsyncpa [#allocation3], 0 }
   0x3   :  { %13 = vsyncpa [#allocation3 + $0x1], 0 }
   0x4   :  { %14 = vsyncpa [#allocation6], 0 }
   0x5   :  { %15 = vsyncpa [#allocation4], 0 }
   0x6   :  { %17 = vsyncpa [#allocation4 + $0x1], 0 }
   0x7   :  { %18 = vsyncpa [#allocation9], 0 }
   0x8   :  { %20 = vsyncpa [#allocation9 + $0x1], 0  ;;  %s942_s18 = smov 0   ;;  %s944_s19 = smov 0  }
   0x9   :  { %s946_s20 = smov 0   ;;  %s948_s21 = smov 0  }
   0xa   :  { %s950_s22 = smov 0   ;;  %s952_s23 = smov 0  }
   0xb LB: > { %s592_s24 = sadd.s32 4294967295, %s897_s23   ;;  %s593_s25 = sadd.s32 4294967294, %s897_s23   ;;  %s897_s23 = sphi %s952_s23, %s26_s23   ;;  %s893_s22 = sphi %s950_s22, %s1209_s22   ;;  %s889_s21 = sphi %s948_s21, %s1208_s21   ;;  %s885_s20 = sphi %s946_s20, %s1207_s20   ;;  %s881_s19 = sphi %s944_s19, %s1206_s19   ;;  %s877_s18 = sphi %s942_s18, %s1205_s18  }
   0xc   : > { %p60_p0 = scmp.ne.s32.totalorder %s881_s19, %s877_s18  ;;  %p976_p1 = scmp.eq.s32.totalorder %s592_s24, 0 }
   0xd   : > { %p980_p2 = scmp.eq.s32.totalorder %s592_s24, 1  ;;  %p155_p3 = scmp.eq.s32.totalorder %s593_s25, 1 }
   0xe   : > { %p986_p4 = por %p976_p1, %p60_p0  ;;  %p594_p5 = scmp.ge.s32.totalorder %s897_s23, 1 }
   0xf   : > { %p991_p6 = por %p155_p3, %p60_p0  ;;  %p190_p7 = scmp.lt.s32.totalorder %s897_s23, 3 }
  0x10   : > { %s1192_s28 = scalar_select %p986_p4, 1, 0 }
  0x11   : > { %s1193_s29 = scalar_select %p991_p6, 1, 0 }
  0x12   : > { %p996_p8 = pnand %p594_p5, %p190_p7  ;;  %s899_s6 = smov [#allocation5]  }
  0x13   : > { %s208_s7 = sshll.u32 %s899_s6, 4  ;;  %s38_s9 = sadd.s32 1, %s893_s22  ;;  %s209_s7 = int_to_ptr.vmem [resolvable:$true] %s208_s7 }
  0x14   : > { %p646_p9 = pneg %p996_p8  ;;  %s740_s10 = scalar_lea.vmem %s209_s7, 256 }
  0x15   : > { %p741_p13 = scmp.ne.s32.totalorder %s209_s7, %s740_s10  ;;  %p748_p5 = scmp.lt.s32.totalorder %s209_s7, %s209_s7 }
  0x16   : > { %p1005_p11 = pnand %p646_p9, %p976_p1  ;;  %p749_p7 = scmp.lt.s32.totalorder %s740_s10, %s740_s10 }
  0x18   : > { %p731_p12 = pneg %p1005_p11  ;;  %p750_p6 = por %p749_p7, %p748_p5 }
  0x1a   : > { %p743_p0 = pnand %p741_p13, %p731_p12 }
  0x1c   : > { %p744_p3 = pneg %p743_p0 }
  0x1e   : > { %p751_p4 = pnand %p750_p6, %p744_p3 }
  0x20   : > { %754 = shalt.err (!%p751_p4)
}
  0x21   : > { %s900_s11 = smov 64   ;;  %s901_s12 = smov 4  }
  0x22   : > { %s1196_s3 = sld [smem:[#allocation15_spill]]  ;;  %p40_p6 = scmp.ge.s32.totalorder %s38_s9, 2 }
  0x23   : > { %s47_s15 = sadd.s32 1, %s885_s20  ;;  %p54_p4 = scmp.ne.s32.totalorder %s885_s20, %s881_s19 }
  0x24   : > { %p55_p9 = scmp.eq.s32.totalorder %s897_s23, 0  ;;  %s1211_s9 = smov (%p40_p6, %s38_s9), 0 }
  0x25   : > { %1197 = sst [smem:[#allocation14_spill]] %s1211_s9  ;;  %p1029_p13 = por %p980_p2, %p54_p4 }
  0x26   : > { %p1023_p12 = por %p55_p9, %p54_p4  ;;  %s42_s24 = ssub.s32 %s893_s22, %s1211_s9 }
  0x27   : > { %p662_p0 = scmp.lt.s32.totalorder %s897_s23, 2  ;;  %s222_s25 = sand.u32 1, %s885_s20  }
  0x28   : > { %649 = dma.hbm_to_vmem [thread:$0]  (!%p1005_p11), %s1196_s3, 256, %s209_s7, [#allocation6], %s900_s11, %s900_s11, %s901_s12  }
  0x29   : > { %p45_p11 = scmp.eq.s32.totalorder %s42_s24, 0  ;;  %s597_s6 = sshll.u32 %s222_s25, 4 }
  0x2a   : > { %s620_s8 = sshll.u32 %s893_s22, 8  ;;  %s226_s13 = scalar_lea.vmem [#allocation2], %s597_s6 }
  0x2b   : > { %s1038_s7 = scalar_select %p45_p11, %s885_s20, %s47_s15  }
  0x2c   : > { %s234_s12 = scalar_lea.hbm %s1181_s0, %s620_s8  ;;  %s235_s14 = sshll.u32 %s226_s13, 4  ;;  %s236_s14 = int_to_ptr.vmem [resolvable:$true] %s235_s14 }
  0x2d   : > { %p1046_p2 = pnand %p662_p0, %p1023_p12  ;;  %s223_s3 = scalar_lea.sflag [#allocation3], %s222_s25 }
  0x2e   : > { %s768_s24 = scalar_lea.vmem %s236_s14, 256  ;;  %s902_s15 = smov [#allocation2]  }
  0x2f   : > { %p757_p3 = pneg %p1046_p2  ;;  %p769_p5 = scmp.ne.s32.totalorder %s236_s14, %s768_s24 }
  0x30   : > { %s773_s9 = sshll.u32 %s902_s15, 4  ;;  %s774_s9 = int_to_ptr.vmem [resolvable:$false] %s773_s9 }
  0x31   : > { %p771_p7 = pnand %p769_p5, %p757_p3  ;;  %s775_s8 = scalar_lea.vmem %s774_s9, 512 }
  0x32   : > { %p776_p4 = scmp.lt.s32.totalorder %s236_s14, %s774_s9  ;;  %p777_p9 = scmp.lt.s32.totalorder %s775_s8, %s768_s24 }
  0x33   : > { %p772_p6 = pneg %p771_p7 }
  0x34   : > { %p778_p11 = por %p777_p9, %p776_p4 }
  0x36   : > { %p779_p10 = pnand %p778_p11, %p772_p6 }
  0x38   : > { %782 = shalt.err (!%p779_p10)
}
  0x39   : > { %s903_s16 = smov 128   ;;  %s904_s6 = smov 8  }
  0x3a   : > { %653 = dma.hbm_to_vmem [thread:$0]  (!%p1046_p2), %s234_s12, 256, %s236_s14, %s223_s3, %s903_s16, %s903_s16, %s904_s6  }
  0x3b   : > { %247 = sbr.rel (%p996_p8) target bundleno = 709 (0x2c5), region = 36  ;;  %s1057_s25 = sand.u32 (!%p996_p8), 1, %s881_s19  }
  0x3c   : > { %s601_s10 = sshll.u32 (!%p996_p8), %s1057_s25, 4  ;;  %s250_s9 = scalar_lea.sflag (!%p996_p8), [#allocation3], %s1057_s25 }
  0x3d   : > { %s253_s11 = scalar_lea.vmem (!%p996_p8), [#allocation2], %s601_s10  ;;  %p1201_p12 = scmp.ne.s32.totalorder (!%p996_p8), %s1192_s28, 0 }
  0x40   : > { %860 = dma.done.wait (%p1201_p12), %s250_s9, 256  }
  0x41   : > { %862 = vsyncadd (%p1201_p12), %s250_s9, 4294967040 }
  0x42   : > { %864 = dma.done.wait (%p976_p1), [#allocation6], 256  }
  0x43   : > { %866 = vsyncadd (%p976_p1), [#allocation6], 4294967040  ;;  %vm297_vm0 = vcmask 261120   ;;  %v293_v0 = vld [vmem:[%s253_s11] sm:$0xff]  ;;  %v294_v1 = vld [vmem:[%s253_s11 + $0x8] sm:$0xff]  ;;  %v905_v15 = vmov 0.0  }
  0x44   : > { %v298_v2 = vsel %vm297_vm0, %v293_v0, 0.0  ;;  %v301_v3 = vsel %vm297_vm0, %v294_v1, 0.0  ;;  %v723_v14 = vld [vmem:[#allocation5 + $0x8] sm:$0xff]   ;;  %628 = vmatprep.subr.bf16.mxu0 %v905_v15  ;;  %vm906_vm1 = vmmov 0   ;;  %v724_v16 = vld [vmem:[#allocation5] sm:$0xff]   ;;  %s603_s12 = sshll.u32 %s1057_s25, 3 }
  0x45   : > { %299 = vadd.xlane.f32.xlu0 %v298_v2  ;;  %632 = vmatprep.mubr.msk.bf16.mxu0 %vm906_vm1, %v905_v15  ;;  %v605_v25 = vld [vmem:[%s1182_s1] ss:$0 sm:$0xff]  ;;  %vm410_vm2 = vcmask 257024   ;;  %s281_s13 = scalar_lea.vmem [#allocation7], %s603_s12  ;;  %s623_s27 = sshll.u32 %s889_s21, 7 }
  0x46   : > { %629 = vmatpush3.bf16.msra.mxu0 %v723_v14  ;;  %v606_v29 = vld [vmem:[%s1183_s2] ss:$0 sm:$0xff]  ;;  %s442_s14 = sshll.u32 %s281_s13, 4  ;;  %s907_s24 = smov 96   ;;  %s1084_s14 = int_to_ptr.vmem [resolvable:$true] %s442_s14 }
  0x47   : > { %630 = vmatprep.subr.bf16.mxu0 %v905_v15  ;;  %s1092_s16 = scalar_lea.hbm %s1185_s4, %s623_s27  ;;  %s422_s6 = scalar_lea.sflag [#allocation4], %s1057_s25 }
  0x48   : > { %s783_s10 = scalar_lea.vmem %s1084_s14, 128  ;;  %s908_s9 = smov [#allocation7]  }
  0x49   : > { %302 = vadd.xlane.f32.xlu0 %v301_v3  ;;  %p784_p1 = scmp.ne.s32.totalorder %s1084_s14, %s783_s10  ;;  %s787_s11 = sshll.u32 %s908_s9, 4  ;;  %s788_s11 = int_to_ptr.vmem [resolvable:$false] %s787_s11 }
  0x4a   : > { %631 = vmatpush3.bf16.msra.mxu0 %v724_v16  ;;  %s789_s3 = scalar_lea.vmem %s788_s11, 256  ;;  %p790_p0 = scmp.lt.s32.totalorder %s1084_s14, %s788_s11 }
  0x4b   : > { %p785_p8 = pnand %p784_p1, %p1029_p13  ;;  %p791_p2 = scmp.lt.s32.totalorder %s789_s3, %s783_s10 }
  0x4d   : > { %p786_p10 = pneg %p785_p8  ;;  %p792_p3 = por %p791_p2, %p790_p0 }
  0x4f   : > { %p793_p5 = pnand %p792_p3, %p786_p10 }
  0xce   : > { %v300_v4 = vpop.xlane.xlu0 %299 }
  0xcf   : > { %v305_v5 = vmul.f32 0.03125, %v300_v4 }
  0xd1   : > { %v307_v6 = vsub.f32 %v293_v0, %v305_v5 }
  0xd2   : > { %v303_v7 = vpop.xlane.xlu0 %302 }
  0xd3   : > { %v306_v8 = vmul.f32 0.03125, %v303_v7  ;;  %v309_v9 = vmul.f32 %v307_v6, %v307_v6 }
  0xd5   : > { %v308_v10 = vsub.f32 %v294_v1, %v306_v8  ;;  %v311_v11 = vsel %vm297_vm0, %v309_v9, 0.0 }
  0xd6   : > { %312 = vadd.xlane.f32.xlu1 %v311_v11 }
  0xd7   : > { %v310_v12 = vmul.f32 %v308_v10, %v308_v10 }
  0xd9   : > { %v314_v13 = vsel %vm297_vm0, %v310_v12, 0.0 }
  0xda   : > { %315 = vadd.xlane.f32.xlu1 %v314_v13 }
 0x15f   : > { %v313_v17 = vpop.xlane.xlu1 %312 }
 0x160   : > { %v317_v18 = vmul.f32 0.03125, %v313_v17 }
 0x162   : > { %v319_v19 = vadd.f32 1e-05, %v317_v18 }
 0x163   : > { %v316_v20 = vpop.xlane.xlu1 %315 }
 0x164   : > { %725 = vrsqrt.f32 %v319_v19  ;;  %v318_v21 = vmul.f32 0.03125, %v316_v20 }
 0x166   : > { %v320_v22 = vadd.f32 1e-05, %v318_v21 }
 0x168   : > { %727 = vrsqrt.f32 %v320_v22 }
 0x171   : > { %v726_v23 = vpop.eup %725 }
 0x172   : > { %v323_v24 = vmul.f32 %v726_v23, %v307_v6 }
 0x174   : > { %v331_v28 = vmul.f32 %v605_v25, %v323_v24 }
 0x175   : > { %v728_v26 = vpop.eup %727 }
 0x176   : > { %v324_v27 = vmul.f32 %v728_v26, %v308_v10  ;;  %v339_v31 = vadd.f32 %v606_v29, %v331_v28 }
 0x178   : > { %v332_v30 = vmul.f32 %v605_v25, %v324_v27 }
 0x17a   : > { %v340_v32 = vadd.f32 %v606_v29, %v332_v30 }
 0x17c   : > { %v341_v33 = vpack.c.bf16 %v340_v32, %v339_v31 }
 0x17e   : > { %633 = vmatmul.mubr.msk.bf16.vlgmr.msra.gmra.mxu0 %vm297_vm0, %v341_v33 }
 0x23e   : > { %v395_v34 = vpop.f32.mrf.mxu0 }
 0x23f   : > { %v621_v35 = vpack.c.bf16 %v395_v34, %v395_v34 }
 0x240   : > { %v634_v36 = vpop.f32.mrf.mxu0 }
 0x241   : > { %413 = vrot.lane.b32.xlu0 %v621_v35, %s907_s24  ;;  %411 = vst.msk [vmem:[%s281_s13] sm:$0xf] %vm410_vm2, %v621_v35 }
 0x242   : > { %v398_v37 = vpop.f32.mrf.mxu0 }
 0x243   : > { %v622_v38 = vpack.c.bf16 %v398_v37, %v398_v37 }
 0x244   : > { %v635_v39 = vpop.f32.mrf.mxu0 }
 0x245   : > { %415 = vrot.lane.b32.xlu1 %v622_v38, %s907_s24  ;;  %412 = vst.msk [vmem:[%s281_s13 + $0x4] sm:$0xf] %vm410_vm2, %v622_v38 }
 0x246   : > { %796 = shalt.err (!%p793_p5)
}
 0x247   : > { %s797_s26 = scalar_lea.hbm %s1092_s16, 128  ;;  %s801_s13 = scalar_lea.hbm %s1185_s4, 256 }
 0x248   : > { %p798_p7 = scmp.ne.s32.totalorder %s1092_s16, %s797_s26  ;;  %p802_p9 = scmp.lt.s32.totalorder %s1092_s16, %s1185_s4 }
 0x249   : > { %p803_p11 = scmp.lt.s32.totalorder %s801_s13, %s797_s26 }
 0x24a   : > { %p799_p6 = pnand %p798_p7, %p1029_p13 }
 0x24b   : > { %p804_p12 = por %p803_p11, %p802_p9 }
 0x24c   : > { %p800_p4 = pneg %p799_p6 }
 0x24e   : > { %p805_p1 = pnand %p804_p12, %p800_p4 }
 0x250   : > { %808 = shalt.err (!%p805_p1)
}
 0x251   : > { %s909_s8 = smov 64   ;;  %s910_s10 = smov 4  }
 0x252   : > { %642 = dma.vmem_to_hbm [thread:$0]  (%p1029_p13), %s1084_s14, 128, %s1092_s16, %s422_s6, %s909_s8, %s909_s8, %s910_s10  }
 0x253   : > { %s288_s9 = scalar_lea.vmem [#allocation8], %s603_s12  ;;  %s1131_s28 = scalar_lea.hbm %s1186_s5, %s623_s27 }
 0x254   : > { %s460_s11 = sshll.u32 %s288_s9, 4  ;;  %s427_s14 = scalar_lea.sflag [#allocation9], %s1057_s25  ;;  %s1124_s11 = int_to_ptr.vmem [resolvable:$true] %s460_s11 }
 0x255   : > { %s809_s12 = scalar_lea.vmem %s1124_s11, 128  ;;  %s911_s16 = smov [#allocation8]  }
 0x256   : > { %p810_p8 = scmp.ne.s32.totalorder %s1124_s11, %s809_s12  ;;  %s813_s6 = sshll.u32 %s911_s16, 4  ;;  %s814_s6 = int_to_ptr.vmem [resolvable:$false] %s813_s6 }
 0x257   : > { %s815_s21 = scalar_lea.vmem %s814_s6, 256  ;;  %p816_p2 = scmp.lt.s32.totalorder %s1124_s11, %s814_s6 }
 0x258   : > { %p811_p10 = pnand %p810_p8, %p1029_p13  ;;  %p817_p3 = scmp.lt.s32.totalorder %s815_s21, %s809_s12 }
 0x25a   : > { %p812_p0 = pneg %p811_p10  ;;  %p818_p5 = por %p817_p3, %p816_p2 }
 0x25c   : > { %p819_p7 = pnand %p818_p5, %p812_p0 }
 0x2b3   : > { %v414_v40 = vpop.permute.xlu0 %413 }
 0x2b4   : > { %419 = vst.msk [vmem:[%s288_s9] sm:$0xf] %vm410_vm2, %v414_v40 }
 0x2b7   : > { %v416_v41 = vpop.permute.xlu1 %415 }
 0x2b8   : > { %420 = vst.msk [vmem:[%s288_s9 + $0x4] sm:$0xf] %vm410_vm2, %v416_v41 }
 0x2b9   : > { %822 = shalt.err (!%p819_p7)
}
 0x2ba   : > { %s823_s27 = scalar_lea.hbm %s1131_s28, 128  ;;  %s827_s13 = scalar_lea.hbm %s1186_s5, 256 }
 0x2bb   : > { %p824_p6 = scmp.ne.s32.totalorder %s1131_s28, %s823_s27  ;;  %p828_p11 = scmp.lt.s32.totalorder %s1131_s28, %s1186_s5 }
 0x2bc   : > { %p829_p12 = scmp.lt.s32.totalorder %s827_s13, %s823_s27 }
 0x2bd   : > { %p825_p4 = pnand %p824_p6, %p1029_p13 }
 0x2be   : > { %p830_p1 = por %p829_p12, %p828_p11 }
 0x2bf   : > { %p826_p9 = pneg %p825_p4 }
 0x2c1   : > { %p831_p8 = pnand %p830_p1, %p826_p9 }
 0x2c3   : > { %834 = shalt.err (!%p831_p8)
}
 0x2c4   : > { %643 = dma.vmem_to_hbm [thread:$0]  (%p1029_p13), %s1124_s11, 128, %s1131_s28, %s427_s14, %s909_s8, %s909_s8, %s910_s10  }
 0x2c5 PF: > { %s475_s9 = sand.u32 1, %s877_s18   ;;  %p1202_p10 = scmp.ne.s32.totalorder %s1193_s29, 0 }
 0x2c6   : > { %p1203_p0 = scmp.ge.s32.totalorder %s897_s23, 2  ;;  %s476_s3 = scalar_lea.sflag [#allocation4], %s475_s9 }
 0x2c8   : > { %p655_p2 = pnand %p1203_p0, %p1202_p10 }
 0x2ca   : > { %p656_p3 = pneg %p655_p2 }
 0x2cc   : > { %868 = dma.done.wait (%p656_p3), %s476_s3, 128  }
 0x2cd   : > { %870 = vsyncadd (%p656_p3), %s476_s3, 4294967168  ;;  %s485_s26 = scalar_lea.sflag [#allocation9], %s475_s9 }
 0x2ce   : > { %872 = dma.done.wait (%p656_p3), %s485_s26, 128  }
 0x2cf   : > { %874 = vsyncadd (%p656_p3), %s485_s26, 4294967168  ;;  %s26_s23 = sadd.s32 1, %s897_s23   ;;  %s1204_s17 = sld [smem:[#allocation14_spill]] }
 0x2d0   : > { %p23_p5 = scmp.ge.s32.totalorder %s26_s23, 4   ;;  %s1205_s18 = smov %s881_s19 }
 0x2d1   : > { %s1206_s19 = smov %s885_s20  ;;  %s1207_s20 = smov %s1038_s7 }
 0x2d2   : > { %s1208_s21 = smov %s893_s22  ;;  %25 = sbr.rel (!%p23_p5) target bundleno = 11 (0xb), region = 102 }
 0x2d5   : > { %s1209_s22 = smov %s1204_s17 }
 0x2d7   :  { %490 = vsyncpa [#allocation3], 1 }
 0x2d8   :  { %492 = vsyncpa [#allocation3 + $0x1], 1 }
 0x2d9   :  { %493 = vsyncpa [#allocation6], 1 }
 0x2da   :  { %494 = vsyncpa [#allocation4], 1 }
 0x2db   :  { %496 = vsyncpa [#allocation4 + $0x1], 1 }
 0x2dc   :  { %497 = vsyncpa [#allocation9], 1 }
 0x2dd   :  { %499 = vsyncpa [#allocation9 + $0x1], 1 }

</bundles_post_ra>
